<compile_context>
chip_gen: v7x
topology: tpu7x:2x2x1
jax: 0.10.0
libtpu: 0.0.40
codegen_flags: <defaults>
</compile_context>

<pallas_src>
import jax
import jax.numpy as jnp
from jax.experimental import pallas as pl
from jax.experimental.pallas import tpu as pltpu

_LANE = 128                         # TPU lane width (last dim of every vreg)
_SMALL_SINGLE_BLOCK_BYTES = 1 << 20  # below this, a single block; no split win


def _swish_kernel(x_ref, o_ref):
    # f(x) = x * sigmoid(x), exact single-tanh form.  tanh goes to the EUP
    # slot; the handful of VALU ops are free filler on an HBM-bound kernel.
    x = x_ref[...].astype(jnp.float32)
    y = x * (0.5 * (jnp.tanh(0.5 * x) + 1.0))
    o_ref[...] = y.astype(o_ref.dtype)


def _tpu_generation_params(itemsize):
    """Returns (block_byte_budget, vmem_limit_bytes_or_None) per generation."""
    kind = ""
    try:
        kind = jax.devices()[0].device_kind.lower()
    except Exception:
        pass
    if "v7" in kind:
        # 64 MiB physical VMEM / 32 MiB scoped default: raise the scoped limit
        # and use 8 MiB blocks (in + out, double-buffered = 32 MiB).
        return 8 << 20, 48 << 20
    if "v6" in kind:
        # 4 MiB blocks -> 16 MiB double-buffered, under the 32 MiB default.
        return 4 << 20, None
    # v5e (16 MiB scoped default) and anything unknown: stay at 2 MiB blocks.
    return 2 << 20, None


def _choose_tile_rows(rows, itemsize, budget_bytes):
    """Pick the tile row count for a (rows, 128) streaming elementwise sweep."""
    sublane = max(8, 32 // itemsize)          # 8 f32, 16 bf16, 32 int8/fp8
    row_bytes = _LANE * itemsize
    max_rows = max(sublane, (budget_bytes // row_bytes) // sublane * sublane)
    total_bytes = rows * row_bytes

    if rows <= max_rows and total_bytes <= _SMALL_SINGLE_BLOCK_BYTES:
        # Single block equal to the full array: any row count is legal.
        return rows

    # Aim for >= 4 grid steps (gives the pipeline prefetch/writeback depth)
    # and keep the step count even so v7x's 2 TensorCores are load-balanced.
    steps = max(4, pl.cdiv(rows, max_rows))
    if steps % 2:
        steps += 1
    tile = pl.cdiv(rows, steps)
    tile = ((tile + sublane - 1) // sublane) * sublane
    return min(tile, max_rows)


@jax.jit
def lambda_forward(x):
    """Apply Lambda(f) with f(x) = x * sigmoid(x), elementwise, via Pallas."""
    orig_shape = x.shape
    orig_dtype = x.dtype
    n = x.size
    if n == 0:
        return x
    itemsize = jnp.dtype(orig_dtype).itemsize

    x_flat = jnp.reshape(x, (-1,))
    n_tail = n % _LANE
    n_main = n - n_tail

    parts = []
    if n_main:
        rows = n_main // _LANE
        x2d = jnp.reshape(x_flat[:n_main], (rows, _LANE))

        budget, vmem_limit = _tpu_generation_params(itemsize)
        tile_rows = _choose_tile_rows(rows, itemsize, budget)
        grid = pl.cdiv(rows, tile_rows)

        out2d = pl.pallas_call(
            _swish_kernel,
            out_shape=jax.ShapeDtypeStruct((rows, _LANE), orig_dtype),
            grid_spec=pltpu.PrefetchScalarGridSpec(
                num_scalar_prefetch=0,
                grid=(grid,),
                in_specs=[pl.BlockSpec((tile_rows, _LANE), lambda i: (i, 0))],
                out_specs=pl.BlockSpec((tile_rows, _LANE), lambda i: (i, 0)),
            ),
            compiler_params=pltpu.CompilerParams(
                dimension_semantics=("parallel",),
                vmem_limit_bytes=vmem_limit,
            ),
            cost_estimate=pl.CostEstimate(
                flops=4 * n_main,
                transcendentals=n_main,
                bytes_accessed=2 * n_main * itemsize,
            ),
        )(x2d)
        parts.append(jnp.reshape(out2d, (-1,)))

    if n_tail:
        # Tiny (<128 element) tail computed in plain jnp; avoids the old
        # pad + output-slice path's two extra full HBM passes over the tensor.
        t = x_flat[n_main:].astype(jnp.float32)
        parts.append((t * (0.5 * (jnp.tanh(0.5 * t) + 1.0))).astype(orig_dtype))

    out_flat = parts[0] if len(parts) == 1 else jnp.concatenate(parts)
    return jnp.reshape(out_flat, orig_shape)


if __name__ == "__main__":
    key = jax.random.PRNGKey(0)
    # NCHW input, consistent with PyTorch conv-style usage of Lambda modules.
    x = jax.random.normal(key, (2, 4, 16, 16), dtype=jnp.float32)

    out = lambda_forward(x)
    out = jax.block_until_ready(out)

    # Reference check against plain JAX f(x) = x * sigmoid(x).  The kernel's
    # tanh form is exact, so only a few f32 ULPs of headroom are needed.
    ref = x * jax.nn.sigmoid(x)
    assert out.shape == x.shape and out.dtype == x.dtype
    assert jnp.max(jnp.abs(out - ref)) < 1e-4

    print("KERNEL_OK")
</pallas_src>

<mosaic_0001>
module attributes {stable_mosaic.version = 11 : i64} {
  func.func @_swish_kernel(%arg0: i32, %arg1: memref<16x128xf32, #tpu.memory_space<vmem>>, %arg2: memref<16x128xf32, #tpu.memory_space<vmem>>) attributes {dimension_semantics = [#tpu.dimension_semantics<parallel>], iteration_bounds = array<i64: 1>, scalar_prefetch = 0 : i64, scratch_operands = 0 : i64, tpu.core_type = #tpu.core_type<tc>, window_params = [{transform_indices = @transform_0, window_bounds = array<i64: 16, 128>}, {transform_indices = @transform_1, window_bounds = array<i64: 16, 128>}]} {
    %c0 = arith.constant 0 : index
    %c0_0 = arith.constant 0 : index
    %0 = vector.load %arg1[%c0, %c0_0] : memref<16x128xf32, #tpu.memory_space<vmem>>, vector<16x128xf32>
    %cst = arith.constant 5.000000e-01 : f32
    %1 = vector.broadcast %cst : f32 to vector<16x128xf32>
    %2 = arith.mulf %1, %0 : vector<16x128xf32>
    %3 = math.tanh %2 : vector<16x128xf32>
    %cst_1 = arith.constant 1.000000e+00 : f32
    %4 = vector.broadcast %cst_1 : f32 to vector<16x128xf32>
    %5 = arith.addf %3, %4 : vector<16x128xf32>
    %cst_2 = arith.constant 5.000000e-01 : f32
    %6 = vector.broadcast %cst_2 : f32 to vector<16x128xf32>
    %7 = arith.mulf %6, %5 : vector<16x128xf32>
    %8 = arith.mulf %0, %7 : vector<16x128xf32>
    %c0_3 = arith.constant 0 : index
    %c0_4 = arith.constant 0 : index
    %9 = vector.load %arg2[%c0_3, %c0_4] : memref<16x128xf32, #tpu.memory_space<vmem>>, vector<16x128xf32>
    tpu.vector_store %arg2[%c0_3, %c0_4], %8 {strides = array<i32>} : memref<16x128xf32, #tpu.memory_space<vmem>>, vector<16x128xf32>,
    return
  }
  func.func @transform_0(%arg0: i32) -> (i32, i32) {
    %c0_i32 = arith.constant 0 : i32
    %c0_i32_0 = arith.constant 0 : i32
    return %arg0, %c0_i32 : i32, i32
  }
  func.func @transform_1(%arg0: i32) -> (i32, i32) {
    %c0_i32 = arith.constant 0 : i32
    %c0_i32_0 = arith.constant 0 : i32
    return %arg0, %c0_i32 : i32, i32
  }
}

</mosaic_0001>

<bundles_post_ra>
// kernel: lambda_forward.1
= control target key start
LH: loop header
LB: loop body
LE: loop exit
PB: predicated region body
PF: predicated region fallthrough
CT: control target
= control target key end

     0   :  { %s52_s0 = inlined_call_operand.vmem [shape: f32[16,128], index: 0, kind: input, shape index: {}]   ;;  %s53_s1 = inlined_call_operand.vmem [shape: f32[16,128], index: 1, kind: output, shape index: {}]  }
   0x1   :  { %v8_v0 = vld [vmem:[%s52_s0] sm:$0xff]  ;;  %v9_v1 = vld [vmem:[%s52_s0 + $0x8] sm:$0xff] }
   0x2   :  { %v10_v2 = vmul.f32 0.5, %v8_v0  ;;  %v11_v3 = vmul.f32 0.5, %v9_v1 }
   0x4   :  { %26 = vtanh.f32 %v10_v2 }
   0x5   :  { %28 = vtanh.f32 %v11_v3 }
   0xe   :  { %v27_v4 = vpop.eup %26 }
   0xf   :  { %v29_v5 = vpop.eup %28  ;;  %v14_v6 = vadd.f32 1.0, %v27_v4 }
  0x10   :  { %v15_v7 = vadd.f32 1.0, %v29_v5 }
  0x11   :  { %v16_v8 = vmul.f32 0.5, %v14_v6 }
  0x12   :  { %v17_v9 = vmul.f32 0.5, %v15_v7 }
  0x13   :  { %v18_v10 = vmul.f32 %v16_v8, %v8_v0 }
  0x14   :  { %v19_v11 = vmul.f32 %v17_v9, %v9_v1 }
  0x15   :  { %20 = vst [vmem:[%s53_s1] sm:$0xff] %v18_v10 }
  0x16   :  { %21 = vst [vmem:[%s53_s1 + $0x8] sm:$0xff] %v19_v11 }

</bundles_post_ra>
